<compile_context>
chip_gen: v5e
topology: v5e:2x2
jax: 0.10.0
libtpu: 0.0.40
codegen_flags: <defaults>
</compile_context>

<pallas_src>
import jax
import jax.numpy as jnp
from jax.experimental import pallas as pl
from jax.experimental.pallas import tpu as pltpu


# ----------------------------------------------------------------------------
# Kernel: single matmul + bias add, everything in VMEM / vregs.
# ----------------------------------------------------------------------------
def generator_kernel(x_ref, w_ref, b_ref, o_ref):
    y = jnp.dot(x_ref[...], w_ref[...], preferred_element_type=jnp.float32)
    o_ref[...] = (y + b_ref[...]).astype(o_ref.dtype)


# ----------------------------------------------------------------------------
# Parameter folding (call ONCE per parameter update, outside the forward).
# ----------------------------------------------------------------------------
def fold_generator_params(params):
    """Fold the bias-free linear chain into a single (zd, xd) weight + bias.

    Valid because GeneratorX has no nonlinearity between layers.  HIGHEST
    precision keeps the folded weights numerically close to the
    layer-by-layer f32 evaluation."""
    hp = jax.lax.Precision.HIGHEST
    w_eff = params["w1"]
    for name in ("w2", "w3", "w4"):
        w_eff = jnp.dot(w_eff, params[name], precision=hp)
    return w_eff, params["b4"]


# ----------------------------------------------------------------------------
# Batch tiling policy.
# ----------------------------------------------------------------------------
def _round_up(n, m):
    return ((n + m - 1) // m) * m


def _pick_batch_tiling(B, max_tile=2048):
    """Return (batch_tile, num_tiles).

    * Pad only to a multiple of 8 (sublane granularity), never to a full
      256-row tile, so ragged batches waste at most 7 rows.
    * B <= 256: one grid step (launch-overhead-dominated regime).
    * B  > 256: >=2 tiles so both v7x TensorCores get work, <=2048 rows per
      tile (>=1 MB output DMAs, ~85% HBM roofline on v5e/v6e).
    """
    Bp8 = _round_up(B, 8)
    if Bp8 <= 256:
        return Bp8, 1
    num_tiles = max(2, -(-Bp8 // max_tile))          # ceil-div, at least 2
    tile = _round_up(-(-Bp8 // num_tiles), 8)
    return tile, num_tiles


# ----------------------------------------------------------------------------
# Forward: x (B, zd) -> (B, xd).  Takes the *pre-folded* weights.
# ----------------------------------------------------------------------------
@jax.jit
def generator_x_forward(x, w_eff, b4):
    B, zd = x.shape
    xd = w_eff.shape[1]

    tile, num_tiles = _pick_batch_tiling(B)
    Bp = tile * num_tiles
    if Bp != B:
        x = jnp.pad(x, ((0, Bp - B), (0, 0)))

    out = pl.pallas_call(
        generator_kernel,
        out_shape=jax.ShapeDtypeStruct((Bp, xd), x.dtype),
        grid_spec=pl.GridSpec(
            grid=(num_tiles,),
            in_specs=[
                # x tiled along batch; weight/bias resident (constant blocks).
                pl.BlockSpec((tile, zd), lambda i: (i, 0)),
                pl.BlockSpec(w_eff.shape, lambda i: (0, 0)),
                pl.BlockSpec(b4.shape, lambda i: (0, 0)),
            ],
            out_specs=pl.BlockSpec((tile, xd), lambda i: (i, 0)),
        ),
        compiler_params=pltpu.CompilerParams(
            dimension_semantics=("parallel",)),
        cost_estimate=pl.CostEstimate(
            flops=2 * Bp * zd * xd,
            transcendentals=0,
            bytes_accessed=Bp * zd * 4 + zd * xd * 4 + xd * 4 + Bp * xd * 4),
    )(x, w_eff, b4)

    return out[:B] if Bp != B else out


# ----------------------------------------------------------------------------
# Init + pure-JAX reference (layer-by-layer, mirrors the PyTorch module).
# ----------------------------------------------------------------------------
def init_generator_params(key, zd=16, xd=256, dtype=jnp.float32):
    """PyTorch-Linear-style init, weights pre-transposed (fan_in, fan_out)."""
    dims = [(zd, 4 * zd), (4 * zd, 16 * zd), (16 * zd, 16 * zd), (16 * zd, xd)]
    keys = jax.random.split(key, 5)
    params = {}
    for idx, (fan_in, fan_out) in enumerate(dims, start=1):
        bound = 1.0 / jnp.sqrt(fan_in)
        params[f"w{idx}"] = jax.random.uniform(
            keys[idx - 1], (fan_in, fan_out), dtype=dtype,
            minval=-bound, maxval=bound)
    bound = 1.0 / jnp.sqrt(dims[-1][0])
    params["b4"] = jax.random.uniform(       # kept 2D (1, xd) for TPU layout
        keys[4], (1, xd), dtype=dtype, minval=-bound, maxval=bound)
    return params


def generator_x_reference(x, params):
    hp = jax.lax.Precision.HIGHEST
    h = jnp.dot(x, params["w1"], precision=hp)
    h = jnp.dot(h, params["w2"], precision=hp)
    h = jnp.dot(h, params["w3"], precision=hp)
    return jnp.dot(h, params["w4"], precision=hp) + params["b4"]


if __name__ == "__main__":
    zd, xd = 16, 256
    key = jax.random.PRNGKey(0)
    pkey, xkey = jax.random.split(key)

    params = init_generator_params(pkey, zd=zd, xd=xd)
    # Fold ONCE (per parameter version), outside the jitted forward.
    w_eff, b4 = jax.block_until_ready(fold_generator_params(params))

    # Small batch: single grid step.
    x = jax.random.normal(xkey, (64, zd), dtype=jnp.float32)
    out = jax.block_until_ready(generator_x_forward(x, w_eff, b4))
    ref = generator_x_reference(x, params)
    assert out.shape == (64, xd)
    assert jnp.allclose(out, ref, atol=1e-4, rtol=1e-4)

    # Ragged batch: pads only to the next multiple of 8 (40 -> 40, no pad).
    x_small = x[:40]
    out_small = jax.block_until_ready(generator_x_forward(x_small, w_eff, b4))
    assert out_small.shape == (40, xd)
    assert jnp.allclose(out_small, ref[:40], atol=1e-4, rtol=1e-4)

    # Larger batch: 2 "parallel" tiles (feeds both v7x TensorCores).
    x_big = jax.random.normal(jax.random.fold_in(xkey, 1), (600, zd),
                              dtype=jnp.float32)
    out_big = jax.block_until_ready(generator_x_forward(x_big, w_eff, b4))
    ref_big = generator_x_reference(x_big, params)
    assert out_big.shape == (600, xd)
    assert jnp.allclose(out_big, ref_big, atol=1e-4, rtol=1e-4)

    print("KERNEL_OK")
</pallas_src>

<mosaic_0001>
module attributes {stable_mosaic.version = 11 : i64} {
  func.func @generator_kernel(%arg0: i32, %arg1: memref<64x16xf32, #tpu.memory_space<vmem>>, %arg2: memref<16x256xf32, #tpu.memory_space<vmem>>, %arg3: memref<1x256xf32, #tpu.memory_space<vmem>>, %arg4: memref<64x256xf32, #tpu.memory_space<vmem>>) attributes {dimension_semantics = [#tpu.dimension_semantics<parallel>], iteration_bounds = array<i64: 1>, scalar_prefetch = 0 : i64, scratch_operands = 0 : i64, tpu.core_type = #tpu.core_type<tc>, window_params = [{transform_indices = @transform_0, window_bounds = array<i64: 64, 16>}, {pipeline_mode = #tpu.pipeline_mode<synchronous>, transform_indices = @transform_1, window_bounds = array<i64: 16, 256>}, {pipeline_mode = #tpu.pipeline_mode<synchronous>, transform_indices = @transform_2, window_bounds = array<i64: 1, 256>}, {transform_indices = @transform_3, window_bounds = array<i64: 64, 256>}]} {
    %c0 = arith.constant 0 : index
    %c0_0 = arith.constant 0 : index
    %0 = vector.load %arg1[%c0, %c0_0] : memref<64x16xf32, #tpu.memory_space<vmem>>, vector<64x16xf32>
    %c0_1 = arith.constant 0 : index
    %c0_2 = arith.constant 0 : index
    %1 = vector.load %arg2[%c0_1, %c0_2] : memref<16x256xf32, #tpu.memory_space<vmem>>, vector<16x256xf32>
    %cst = arith.constant dense<0.000000e+00> : vector<64x256xf32>
    %2 = tpu.matmul %0, %1, %cst {dimension_numbers = #tpu.dot_dimension_numbers<[1], [0], [0], [1], [0, 0, 1, 1], [], []>} : vector<64x16xf32>, vector<16x256xf32>, vector<64x256xf32> -> vector<64x256xf32>
    %c0_3 = arith.constant 0 : index
    %c0_4 = arith.constant 0 : index
    %3 = vector.load %arg3[%c0_3, %c0_4] : memref<1x256xf32, #tpu.memory_space<vmem>>, vector<1x256xf32>
    %4 = vector.broadcast %3 : vector<1x256xf32> to vector<64x256xf32>
    %5 = arith.addf %2, %4 : vector<64x256xf32>
    %c0_5 = arith.constant 0 : index
    %c0_6 = arith.constant 0 : index
    %6 = vector.load %arg4[%c0_5, %c0_6] : memref<64x256xf32, #tpu.memory_space<vmem>>, vector<64x256xf32>
    tpu.vector_store %arg4[%c0_5, %c0_6], %5 {strides = array<i32>} : memref<64x256xf32, #tpu.memory_space<vmem>>, vector<64x256xf32>,
    return
  }
  func.func @transform_0(%arg0: i32) -> (i32, i32) {
    %c0_i32 = arith.constant 0 : i32
    %c0_i32_0 = arith.constant 0 : i32
    return %arg0, %c0_i32 : i32, i32
  }
  func.func @transform_1(%arg0: i32) -> (i32, i32) {
    %c0_i32 = arith.constant 0 : i32
    %c0_i32_0 = arith.constant 0 : i32
    %c0_i32_1 = arith.constant 0 : i32
    return %c0_i32, %c0_i32_0 : i32, i32
  }
  func.func @transform_2(%arg0: i32) -> (i32, i32) {
    %c0_i32 = arith.constant 0 : i32
    %c0_i32_0 = arith.constant 0 : i32
    %c0_i32_1 = arith.constant 0 : i32
    return %c0_i32, %c0_i32_0 : i32, i32
  }
  func.func @transform_3(%arg0: i32) -> (i32, i32) {
    %c0_i32 = arith.constant 0 : i32
    %c0_i32_0 = arith.constant 0 : i32
    return %arg0, %c0_i32 : i32, i32
  }
}

</mosaic_0001>

<bundles_post_ra>
// kernel: generator_x_forward.1
= control target key start
LH: loop header
LB: loop body
LE: loop exit
PB: predicated region body
PF: predicated region fallthrough
CT: control target
= control target key end

     0   :  { %vm33_vm0 = vcmask 130048   ;;  %s304_s0 = inlined_call_operand.vmem [shape: f32[64,16], index: 0, kind: input, shape index: {}]   ;;  %s305_s1 = inlined_call_operand.vmem [shape: f32[16,256], index: 1, kind: input, shape index: {}]   ;;  %s306_s2 = inlined_call_operand.vmem [shape: f32[1,256], index: 2, kind: input, shape index: {}]   ;;  %s307_s3 = inlined_call_operand.hbm [shape: f32[64,256], index: 3, kind: output, shape index: {}]  }
   0x1   :  { %v25_v0 = vld [vmem:[%s305_s1 + $0x10] sm:$0xff]  ;;  %v26_v1 = vld [vmem:[%s305_s1 + $0x18] sm:$0xff]  ;;  %v23_v2 = vld [vmem:[%s305_s1] sm:$0xff] }
   0x2   :  { %190 = vmatpush.msra.mxu2 %v25_v0  ;;  %192 = vmatpush.msra.mxu3 %v26_v1  ;;  %v24_v3 = vld [vmem:[%s305_s1 + $0x8] sm:$0xff]  ;;  %v19_v4 = vld [vmem:[%s304_s0 + $0x20] sm:$0xff] }
   0x3   :  { %72 = vmatpush.msra.mxu0 %v25_v0  ;;  %113 = vmatpush.msra.mxu1 %v26_v1  ;;  %v15_v5 = vld [vmem:[%s304_s0] sm:$0xff] }
   0x4   :  { %191 = vmatpush.msra.mxu2 %v23_v2  ;;  %193 = vmatpush.msra.mxu3 %v24_v3 }
   0x5   :  { %178 = vmatmul.msk.f32.vlgmr.msra.gmra.mxu2 %vm33_vm0, %v19_v4  ;;  %186 = vmatmul.msk.f32.vlgmr.msra.gmra.mxu3 %vm33_vm0, %v19_v4 }
   0x6   :  { %8 = vsyncpa [#allocation3], 0  ;;  %73 = vmatpush.msra.mxu0 %v23_v2  ;;  %114 = vmatpush.msra.mxu1 %v24_v3  ;;  %v20_v6 = vld [vmem:[%s304_s0 + $0x28] sm:$0xff]  ;;  %v21_v8 = vld [vmem:[%s304_s0 + $0x30] sm:$0xff]  ;;  %s162_s12 = sshll.u32 %s307_s3, 4  ;;  %s224_s13 = smov 256   ;;  %s163_s12 = int_to_ptr.hbm [resolvable:$true] %s162_s12 }
   0x7   :  { %174 = vmatmul.msk.f32.vlgmr.msra.gmra.mxu0 %vm33_vm0, %v15_v5  ;;  %182 = vmatmul.msk.f32.vlgmr.msra.gmra.mxu1 %vm33_vm0, %v15_v5  ;;  %v16_v7 = vld [vmem:[%s304_s0 + $0x8] sm:$0xff]  ;;  %v17_v9 = vld [vmem:[%s304_s0 + $0x10] sm:$0xff]  ;;  %v22_v10 = vld [vmem:[%s304_s0 + $0x38] sm:$0xff]  ;;  %s225_s14 = smov 16  }
   0x8   :  { %v18_v11 = vld [vmem:[%s304_s0 + $0x18] sm:$0xff]  ;;  %v27_v12 = vld [vmem:[%s306_s2] sm:$0x3]  ;;  %s223_s0 = smov [#allocation2]  }
   0x9   :  { %v29_v13 = vperm.slane %v27_v12, 0  ;;  %v30_v14 = vperm.slane %v27_v12, 1  ;;  %s160_s2 = sshll.u32 %s223_s0, 4  ;;  %s161_s2 = int_to_ptr.vmem [resolvable:$true] %s160_s2 }
   0xd   :  { %179 = vmatmul.msk.f32.gmra.mxu2 %vm33_vm0, %v20_v6  ;;  %187 = vmatmul.msk.f32.gmra.mxu3 %vm33_vm0, %v20_v6 }
   0xf   :  { %175 = vmatmul.msk.f32.gmra.mxu0 %vm33_vm0, %v16_v7  ;;  %183 = vmatmul.msk.f32.gmra.mxu1 %vm33_vm0, %v16_v7 }
  0x15   :  { %180 = vmatmul.msk.f32.gmra.mxu2 %vm33_vm0, %v21_v8  ;;  %188 = vmatmul.msk.f32.gmra.mxu3 %vm33_vm0, %v21_v8 }
  0x17   :  { %176 = vmatmul.msk.f32.gmra.mxu0 %vm33_vm0, %v17_v9  ;;  %184 = vmatmul.msk.f32.gmra.mxu1 %vm33_vm0, %v17_v9 }
  0x1d   :  { %181 = vmatmul.msk.f32.gmra.mxu2 %vm33_vm0, %v22_v10  ;;  %189 = vmatmul.msk.f32.gmra.mxu3 %vm33_vm0, %v22_v10 }
  0x1f   :  { %177 = vmatmul.msk.f32.gmra.mxu0 %vm33_vm0, %v18_v11  ;;  %185 = vmatmul.msk.f32.gmra.mxu1 %vm33_vm0, %v18_v11 }
  0x84   :  { %v75_v15 = vpop.f32.mrf.mxu0  ;;  %v116_v16 = vpop.f32.mrf.mxu1 }
  0x85   :  { %v76_v17 = vadd.f32 %v75_v15, %v29_v13  ;;  %v117_v18 = vadd.f32 %v116_v16, %v30_v14 }
  0x87   :  { %140 = vst [vmem:[#allocation2] sm:$0xff] %v76_v17 }
  0x88   :  { %v87_v19 = vpop.f32.mrf.mxu2  ;;  %141 = vst [vmem:[#allocation2 + $0x8] sm:$0xff] %v117_v18  ;;  %v128_v20 = vpop.f32.mrf.mxu3 }
  0x89   :  { %v88_v21 = vadd.f32 %v87_v19, %v29_v13  ;;  %v129_v22 = vadd.f32 %v128_v20, %v30_v14 }
  0x8b   :  { %148 = vst [vmem:[#allocation2 + $0x40] sm:$0xff] %v88_v21 }
  0x8c   :  { %149 = vst [vmem:[#allocation2 + $0x48] sm:$0xff] %v129_v22  ;;  %v78_v23 = vpop.f32.mrf.mxu0  ;;  %v119_v24 = vpop.f32.mrf.mxu1 }
  0x8d   :  { %v79_v25 = vadd.f32 %v78_v23, %v29_v13  ;;  %v120_v26 = vadd.f32 %v119_v24, %v30_v14 }
  0x8f   :  { %142 = vst [vmem:[#allocation2 + $0x10] sm:$0xff] %v79_v25 }
  0x90   :  { %v90_v27 = vpop.f32.mrf.mxu2  ;;  %143 = vst [vmem:[#allocation2 + $0x18] sm:$0xff] %v120_v26  ;;  %v131_v28 = vpop.f32.mrf.mxu3 }
  0x91   :  { %v91_v29 = vadd.f32 %v90_v27, %v29_v13  ;;  %v132_v30 = vadd.f32 %v131_v28, %v30_v14 }
  0x93   :  { %150 = vst [vmem:[#allocation2 + $0x50] sm:$0xff] %v91_v29 }
  0x94   :  { %151 = vst [vmem:[#allocation2 + $0x58] sm:$0xff] %v132_v30  ;;  %v81_v31 = vpop.f32.mrf.mxu0  ;;  %v122_v32 = vpop.f32.mrf.mxu1 }
  0x95   :  { %v82_v33 = vadd.f32 %v81_v31, %v29_v13  ;;  %v123_v34 = vadd.f32 %v122_v32, %v30_v14 }
  0x97   :  { %144 = vst [vmem:[#allocation2 + $0x20] sm:$0xff] %v82_v33 }
  0x98   :  { %v93_v35 = vpop.f32.mrf.mxu2  ;;  %145 = vst [vmem:[#allocation2 + $0x28] sm:$0xff] %v123_v34  ;;  %v134_v36 = vpop.f32.mrf.mxu3 }
  0x99   :  { %v94_v37 = vadd.f32 %v93_v35, %v29_v13  ;;  %v135_v38 = vadd.f32 %v134_v36, %v30_v14 }
  0x9b   :  { %152 = vst [vmem:[#allocation2 + $0x60] sm:$0xff] %v94_v37 }
  0x9c   :  { %153 = vst [vmem:[#allocation2 + $0x68] sm:$0xff] %v135_v38  ;;  %v84_v39 = vpop.f32.mrf.mxu0  ;;  %v125_v40 = vpop.f32.mrf.mxu1 }
  0x9d   :  { %v85_v41 = vadd.f32 %v84_v39, %v29_v13  ;;  %v126_v42 = vadd.f32 %v125_v40, %v30_v14 }
  0x9f   :  { %146 = vst [vmem:[#allocation2 + $0x30] sm:$0xff] %v85_v41 }
  0xa0   :  { %v96_v43 = vpop.f32.mrf.mxu2  ;;  %147 = vst [vmem:[#allocation2 + $0x38] sm:$0xff] %v126_v42  ;;  %v137_v44 = vpop.f32.mrf.mxu3 }
  0xa1   :  { %v97_v45 = vadd.f32 %v96_v43, %v29_v13  ;;  %v138_v46 = vadd.f32 %v137_v44, %v30_v14 }
  0xa3   :  { %154 = vst [vmem:[#allocation2 + $0x70] sm:$0xff] %v97_v45 }
  0xa4   :  { %155 = vst [vmem:[#allocation2 + $0x78] sm:$0xff] %v138_v46 }
  0xa5   :  { %168 = dma.vmem_to_hbm [thread:$0]  %s161_s2, 2048, %s163_s12, [#allocation3], %s224_s13, %s224_s13, %s225_s14  }
  0xa6   :  { %221 = dma.done.wait [#allocation3], 2048  }
  0xa7   :  { %222 = vsyncadd [#allocation3], 4294965248 }
  0xa8   :  { %173 = vsyncpa [#allocation3], 1 }

</bundles_post_ra>
